<compile_context>
chip_gen: v7x
topology: tpu7x:2x2x1
jax: 0.10.0
libtpu: 0.0.40
codegen_flags: <defaults>
</compile_context>

<pallas_src>
import jax
import jax.numpy as jnp
from jax import lax
from jax.experimental import pallas as pl
from jax.experimental.pallas import tpu as pltpu


def _aa_kernel(a_ref, x_ref, bt_ref, o_ref):
    # a_ref: (Ho, H)  bt_ref: (W, Wo)  x_ref: (CB, H, W)  o_ref: (CB, Ho, Wo)
    cb, h, w = x_ref.shape
    a = a_ref[...]
    bt = bt_ref[...]
    x = x_ref[...]                               # native dtype (f32 or bf16)

    # W pass: one MXU matmul with M = CB*H.  The (CB, H, W) -> (CB*H, W)
    # leading-dim merge is a layout no-op when H is a multiple of 8.
    y = jnp.dot(x.reshape(cb * h, w), bt, preferred_element_type=jnp.float32)
    y = y.astype(a.dtype)                        # keep MXU operands in compute dtype

    # H pass: per-channel (Ho, H) @ (H, Wo), statically unrolled (CB is static).
    for c in range(cb):
        o_ref[c] = jnp.dot(
            a, y[c * h:(c + 1) * h, :],
            preferred_element_type=jnp.float32).astype(o_ref.dtype)


def _gaussian_1d(scale):
    sigma = (1.0 / scale - 1.0) / 2.0
    ks = 2 * round(sigma * 4) + 1
    ka = ks // 2
    kb = ka - 1 if ks % 2 == 0 else ka
    mean = (ks - 1) / 2.0
    ax = jnp.arange(ks, dtype=jnp.float32)
    g = jnp.exp(-((ax - mean) ** 2) / (2.0 * sigma ** 2))
    return g, ks, ka, kb


def _sel_matrix(n_out, n_in, s, ka, ks, gn, dtype):
    # Output row r gathers original input rows r*s - ka .. r*s - ka + ks - 1
    # weighted by gn; out-of-range taps hit zero padding and are simply
    # dropped, i.e. the padding is folded into the matrix.
    rows = jnp.arange(n_out)[:, None]
    cols = jnp.arange(n_in)[None, :]
    off = (cols + ka) - rows * s
    valid = (off >= 0) & (off < ks)
    return jnp.where(valid, gn[jnp.clip(off, 0, ks - 1)], 0.0).astype(dtype)


def _pick_channel_block(nc, h, w, ho, wo, itemsize):
    # Conservative VMEM budget (double-buffered in/out blocks + f32 temps +
    # A/BT) that fits v7x's 32 MiB default-scoped VMEM with headroom; larger
    # VMEM on v5e/v6e just means more slack.
    budget = 12 << 20
    fixed = (ho * h + w * wo) * 4
    best = 1
    for cb in range(1, nc + 1):
        if nc % cb != 0:
            continue
        if nc >= 2 and nc // cb < 2:
            continue  # keep >= 2 grid steps so v7x's two TensorCores both work
        need = fixed + 2 * cb * (h * w + ho * wo) * itemsize + cb * h * wo * 4
        if need <= budget:
            best = cb
    return best


def make_weight_buffer(channels, scale):
    """Deterministic per-channel (C, 1, ks, ks) weight, exactly as in __init__."""
    g, ks, _, _ = _gaussian_1d(scale)
    k2d = g[:, None] * g[None, :]
    k2d = k2d / jnp.sum(k2d)
    return jnp.tile(k2d[None, None], (channels, 1, 1, 1))


def anti_alias_interpolation2d(x, scale):
    """Pallas TPU implementation of AntiAliasInterpolation2d.forward. x: (N,C,H,W)."""
    if scale == 1.0:
        return x  # sigma would be 0 -> NaN weights; op degenerates to identity

    N, C, H, W = x.shape
    g, ks, ka, kb = _gaussian_1d(scale)
    s = int(1.0 / scale)
    Ho, Wo = -(-H // s), -(-W // s)  # matches PyTorch ::s slicing (ceil)

    # bf16 MXU operands when the input is bf16 (f32 accumulation); f32 otherwise.
    compute_dtype = jnp.bfloat16 if x.dtype == jnp.bfloat16 else jnp.float32
    gn = g / jnp.sum(g)                                    # normalized 1-D factor
    A = _sel_matrix(Ho, H, s, ka, ks, gn, compute_dtype)   # (Ho, H)
    BT = _sel_matrix(Wo, W, s, ka, ks, gn, compute_dtype).T  # (W, Wo)

    NC = N * C
    CB = _pick_channel_block(NC, H, W, Ho, Wo, x.dtype.itemsize)
    xf = x.reshape(NC, H, W)  # leading-dim merge: free, no HBM copy

    # TODO(synk): add spatial (H) tiling for planes too large to fit VMEM at CB=1,
    # and a banded/polyphase A formulation to cut dense-matrix FLOP inflation on v5e.

    flops = 2 * NC * (H * W * Wo + Ho * H * Wo)
    bytes_accessed = (xf.size * x.dtype.itemsize
                      + NC * Ho * Wo * x.dtype.itemsize
                      + A.size * A.dtype.itemsize
                      + BT.size * BT.dtype.itemsize)

    out = pl.pallas_call(
        _aa_kernel,
        out_shape=jax.ShapeDtypeStruct((NC, Ho, Wo), x.dtype),
        grid_spec=pltpu.PrefetchScalarGridSpec(
            num_scalar_prefetch=0,
            grid=(NC // CB,),
            in_specs=[
                pl.BlockSpec((Ho, H), lambda i: (0, 0)),       # grid-invariant
                pl.BlockSpec((CB, H, W), lambda i: (i, 0, 0)),
                pl.BlockSpec((W, Wo), lambda i: (0, 0)),       # grid-invariant
            ],
            out_specs=pl.BlockSpec((CB, Ho, Wo), lambda i: (i, 0, 0)),
        ),
        compiler_params=pltpu.CompilerParams(
            dimension_semantics=("parallel",)),
        cost_estimate=pl.CostEstimate(
            flops=flops, transcendentals=0, bytes_accessed=bytes_accessed),
    )(A, xf, BT)
    return out.reshape(N, C, Ho, Wo)


def _reference(x, scale):
    """Pure-JAX reference replicating the PyTorch forward exactly."""
    N, C, H, W = x.shape
    _, ks, ka, kb = _gaussian_1d(scale)
    s = int(1.0 / scale)
    weight = make_weight_buffer(C, scale)  # (C, 1, ks, ks)
    xp = jnp.pad(x, ((0, 0), (0, 0), (ka, kb), (ka, kb)))
    out = lax.conv_general_dilated(
        xp, weight, window_strides=(1, 1), padding="VALID",
        dimension_numbers=("NCHW", "OIHW", "NCHW"), feature_group_count=C)
    return out[:, :, ::s, ::s]


if __name__ == "__main__":
    key = jax.random.PRNGKey(0)
    # channels=4, scale=0.5 -> sigma=0.5, kernel_size=5, ka=kb=2, int_inv_scale=2
    x = jax.random.normal(key, (2, 4, 16, 16), dtype=jnp.float32)

    out = anti_alias_interpolation2d(x, scale=0.5)
    out = jax.block_until_ready(out)
    assert out.shape == (2, 4, 8, 8), out.shape

    ref = _reference(x, scale=0.5)
    assert jnp.allclose(out, ref, atol=1e-3, rtol=1e-3), \
        float(jnp.max(jnp.abs(out - ref)))

    print("KERNEL_OK")
</pallas_src>

<mosaic_0001>
module attributes {stable_mosaic.version = 11 : i64} {
  func.func @_aa_kernel(%arg0: i32, %arg1: memref<8x16xf32, #tpu.memory_space<vmem>>, %arg2: memref<4x16x16xf32, #tpu.memory_space<vmem>>, %arg3: memref<16x8xf32, #tpu.memory_space<vmem>>, %arg4: memref<4x8x8xf32, #tpu.memory_space<vmem>>) attributes {dimension_semantics = [#tpu.dimension_semantics<parallel>], iteration_bounds = array<i64: 2>, scalar_prefetch = 0 : i64, scratch_operands = 0 : i64, tpu.core_type = #tpu.core_type<tc>, window_params = [{pipeline_mode = #tpu.pipeline_mode<synchronous>, transform_indices = @transform_0, window_bounds = array<i64: 8, 16>}, {transform_indices = @transform_1, window_bounds = array<i64: 4, 16, 16>}, {pipeline_mode = #tpu.pipeline_mode<synchronous>, transform_indices = @transform_2, window_bounds = array<i64: 16, 8>}, {transform_indices = @transform_3, window_bounds = array<i64: 4, 8, 8>}]} {
    %c0 = arith.constant 0 : index
    %c0_0 = arith.constant 0 : index
    %0 = vector.load %arg1[%c0, %c0_0] : memref<8x16xf32, #tpu.memory_space<vmem>>, vector<8x16xf32>
    %c0_1 = arith.constant 0 : index
    %c0_2 = arith.constant 0 : index
    %1 = vector.load %arg3[%c0_1, %c0_2] : memref<16x8xf32, #tpu.memory_space<vmem>>, vector<16x8xf32>
    %c0_3 = arith.constant 0 : index
    %c0_4 = arith.constant 0 : index
    %c0_5 = arith.constant 0 : index
    %2 = vector.load %arg2[%c0_3, %c0_4, %c0_5] : memref<4x16x16xf32, #tpu.memory_space<vmem>>, vector<4x16x16xf32>
    %3 = vector.shape_cast %2 : vector<4x16x16xf32> to vector<64x16xf32>
    %cst = arith.constant dense<0.000000e+00> : vector<64x8xf32>
    %4 = tpu.matmul %3, %1, %cst {dimension_numbers = #tpu.dot_dimension_numbers<[1], [0], [0], [1], [0, 0, 1, 1], [], []>} : vector<64x16xf32>, vector<16x8xf32>, vector<64x8xf32> -> vector<64x8xf32>
    %5 = vector.extract_strided_slice %4 {offsets = [0, 0], sizes = [16, 8], strides = [1, 1]} : vector<64x8xf32> to vector<16x8xf32>
    %cst_6 = arith.constant dense<0.000000e+00> : vector<8x8xf32>
    %6 = tpu.matmul %0, %5, %cst_6 {dimension_numbers = #tpu.dot_dimension_numbers<[1], [0], [0], [1], [0, 0, 1, 1], [], []>} : vector<8x16xf32>, vector<16x8xf32>, vector<8x8xf32> -> vector<8x8xf32>
    %c0_7 = arith.constant 0 : index
    %c0_8 = arith.constant 0 : index
    %c0_9 = arith.constant 0 : index
    %7 = vector.load %arg4[%c0_7, %c0_8, %c0_9] : memref<4x8x8xf32, #tpu.memory_space<vmem>>, vector<1x8x8xf32>
    %8 = vector.shape_cast %7 : vector<1x8x8xf32> to vector<8x8xf32>
    %9 = vector.shape_cast %6 : vector<8x8xf32> to vector<1x8x8xf32>
    tpu.vector_store %arg4[%c0_7, %c0_8, %c0_9], %9 {strides = array<i32>} : memref<4x8x8xf32, #tpu.memory_space<vmem>>, vector<1x8x8xf32>,
    %10 = vector.extract_strided_slice %4 {offsets = [16, 0], sizes = [16, 8], strides = [1, 1]} : vector<64x8xf32> to vector<16x8xf32>
    %cst_10 = arith.constant dense<0.000000e+00> : vector<8x8xf32>
    %11 = tpu.matmul %0, %10, %cst_10 {dimension_numbers = #tpu.dot_dimension_numbers<[1], [0], [0], [1], [0, 0, 1, 1], [], []>} : vector<8x16xf32>, vector<16x8xf32>, vector<8x8xf32> -> vector<8x8xf32>
    %c1 = arith.constant 1 : index
    %c0_11 = arith.constant 0 : index
    %c0_12 = arith.constant 0 : index
    %12 = vector.load %arg4[%c1, %c0_11, %c0_12] : memref<4x8x8xf32, #tpu.memory_space<vmem>>, vector<1x8x8xf32>
    %13 = vector.shape_cast %12 : vector<1x8x8xf32> to vector<8x8xf32>
    %14 = vector.shape_cast %11 : vector<8x8xf32> to vector<1x8x8xf32>
    tpu.vector_store %arg4[%c1, %c0_11, %c0_12], %14 {strides = array<i32>} : memref<4x8x8xf32, #tpu.memory_space<vmem>>, vector<1x8x8xf32>,
    %15 = vector.extract_strided_slice %4 {offsets = [32, 0], sizes = [16, 8], strides = [1, 1]} : vector<64x8xf32> to vector<16x8xf32>
    %cst_13 = arith.constant dense<0.000000e+00> : vector<8x8xf32>
    %16 = tpu.matmul %0, %15, %cst_13 {dimension_numbers = #tpu.dot_dimension_numbers<[1], [0], [0], [1], [0, 0, 1, 1], [], []>} : vector<8x16xf32>, vector<16x8xf32>, vector<8x8xf32> -> vector<8x8xf32>
    %c2 = arith.constant 2 : index
    %c0_14 = arith.constant 0 : index
    %c0_15 = arith.constant 0 : index
    %17 = vector.load %arg4[%c2, %c0_14, %c0_15] : memref<4x8x8xf32, #tpu.memory_space<vmem>>, vector<1x8x8xf32>
    %18 = vector.shape_cast %17 : vector<1x8x8xf32> to vector<8x8xf32>
    %19 = vector.shape_cast %16 : vector<8x8xf32> to vector<1x8x8xf32>
    tpu.vector_store %arg4[%c2, %c0_14, %c0_15], %19 {strides = array<i32>} : memref<4x8x8xf32, #tpu.memory_space<vmem>>, vector<1x8x8xf32>,
    %20 = vector.extract_strided_slice %4 {offsets = [48, 0], sizes = [16, 8], strides = [1, 1]} : vector<64x8xf32> to vector<16x8xf32>
    %cst_16 = arith.constant dense<0.000000e+00> : vector<8x8xf32>
    %21 = tpu.matmul %0, %20, %cst_16 {dimension_numbers = #tpu.dot_dimension_numbers<[1], [0], [0], [1], [0, 0, 1, 1], [], []>} : vector<8x16xf32>, vector<16x8xf32>, vector<8x8xf32> -> vector<8x8xf32>
    %c3 = arith.constant 3 : index
    %c0_17 = arith.constant 0 : index
    %c0_18 = arith.constant 0 : index
    %22 = vector.load %arg4[%c3, %c0_17, %c0_18] : memref<4x8x8xf32, #tpu.memory_space<vmem>>, vector<1x8x8xf32>
    %23 = vector.shape_cast %22 : vector<1x8x8xf32> to vector<8x8xf32>
    %24 = vector.shape_cast %21 : vector<8x8xf32> to vector<1x8x8xf32>
    tpu.vector_store %arg4[%c3, %c0_17, %c0_18], %24 {strides = array<i32>} : memref<4x8x8xf32, #tpu.memory_space<vmem>>, vector<1x8x8xf32>,
    return
  }
  func.func @transform_0(%arg0: i32) -> (i32, i32) {
    %c0_i32 = arith.constant 0 : i32
    %c0_i32_0 = arith.constant 0 : i32
    %c0_i32_1 = arith.constant 0 : i32
    return %c0_i32, %c0_i32_0 : i32, i32
  }
  func.func @transform_1(%arg0: i32) -> (i32, i32, i32) {
    %c0_i32 = arith.constant 0 : i32
    %c0_i32_0 = arith.constant 0 : i32
    %c0_i32_1 = arith.constant 0 : i32
    return %arg0, %c0_i32, %c0_i32_0 : i32, i32, i32
  }
  func.func @transform_2(%arg0: i32) -> (i32, i32) {
    %c0_i32 = arith.constant 0 : i32
    %c0_i32_0 = arith.constant 0 : i32
    %c0_i32_1 = arith.constant 0 : i32
    return %c0_i32, %c0_i32_0 : i32, i32
  }
  func.func @transform_3(%arg0: i32) -> (i32, i32, i32) {
    %c0_i32 = arith.constant 0 : i32
    %c0_i32_0 = arith.constant 0 : i32
    %c0_i32_1 = arith.constant 0 : i32
    return %arg0, %c0_i32, %c0_i32_0 : i32, i32, i32
  }
}

</mosaic_0001>

<bundles_post_ra>
// kernel: tpu_custom_call.1
= control target key start
LH: loop header
LB: loop body
LE: loop exit
PB: predicated region body
PF: predicated region fallthrough
CT: control target
= control target key end

     0   :  { %8 = vsyncpa [#allocation3], 0  ;;  %s1198_s0 = inlined_call_operand.vmem [shape: f32[8,16], index: 0, kind: input, shape index: {}]   ;;  %s1199_s1 = inlined_call_operand.hbm [shape: f32[8,16,16], index: 1, kind: input, shape index: {}]   ;;  %s1200_s2 = inlined_call_operand.vmem [shape: f32[16,8], index: 2, kind: input, shape index: {}]   ;;  %s1201_s3 = inlined_call_operand.hbm [shape: f32[8,8,8], index: 3, kind: output, shape index: {}]  }
   0x1   :  { %10 = vsyncpa [#allocation3 + $0x1], 0 }
   0x2   :  { %11 = vsyncpa [#allocation4], 0 }
   0x3   :  { %13 = vsyncpa [#allocation4 + $0x1], 0  ;;  %s1006_s12 = smov 0   ;;  %s1008_s13 = smov 0  }
   0x4   :  { %s1010_s14 = smov 0   ;;  %s1012_s15 = smov 0  }
   0x5 LB: > { %s1027_s16 = sadd.s32 4294967295, %s975_s15   ;;  %s711_s17 = sadd.s32 4294967294, %s975_s15   ;;  %s975_s15 = sphi %s1012_s15, %s1214_s15   ;;  %s971_s14 = sphi %s1010_s14, %s1213_s14   ;;  %s967_s13 = sphi %s1008_s13, %s1212_s13   ;;  %s963_s12 = sphi %s1006_s12, %s1211_s12  }
   0x6   : > { %s1031_s18 = sadd.s32 1, %s975_s15   ;;  %s47_s19 = sadd.s32 1, %s971_s14 }
   0x7   : > { %s44_s20 = ssub.s32 %s975_s15, %s1031_s18  ;;  %p54_p0 = scmp.ne.s32.totalorder %s971_s14, %s967_s13 }
   0x8   : > { %p45_p1 = scmp.eq.s32.totalorder %s44_s20, 0  ;;  %p55_p2 = scmp.eq.s32.totalorder %s975_s15, 0 }
   0x9   : > { %p60_p3 = scmp.ne.s32.totalorder %s967_s13, %s963_s12  ;;  %p61_p4 = scmp.eq.s32.totalorder %s1027_s16, 0 }
   0xa   : > { %s1043_s21 = scalar_select %p45_p1, %s971_s14, %s47_s19  }
   0xb   : > { %p1045_p5 = por %p55_p2, %p54_p0  ;;  %p1049_p6 = por %p61_p4, %p60_p3 }
   0xc   : > { %p105_p7 = scmp.eq.s32.totalorder %s1027_s16, 1  ;;  %p111_p8 = scmp.eq.s32.totalorder %s711_s17, 1 }
   0xd   : > { %p838_p10 = scmp.lt.s32.totalorder %s975_s15, 2  ;;  %s137_s26 = sand.u32 1, %s971_s14  }
   0xe   : > { %p1056_p11 = por %p105_p7, %p54_p0  ;;  %p1060_p12 = por %p111_p8, %p60_p3 }
   0xf   : > { %s742_s27 = sshll.u32 %s975_s15, 10  ;;  %s714_s28 = sshll.u32 %s137_s26, 6 }
  0x10   : > { %s1205_s24 = scalar_select %p1056_p11, 1, 0 }
  0x11   : > { %s1206_s25 = scalar_select %p1060_p12, 1, 0 }
  0x12   : > { %s1069_s4 = scalar_lea.hbm %s1199_s1, %s742_s27  ;;  %s141_s5 = scalar_lea.vmem [#allocation2], %s714_s28 }
  0x13   : > { %s149_s6 = sshll.u32 %s141_s5, 4  ;;  %p1073_p13 = pnand %p838_p10, %p1045_p5  ;;  %s1077_s6 = int_to_ptr.vmem [resolvable:$true] %s149_s6 }
  0x14   : > { %s1079_s8 = scalar_lea.sflag [#allocation3], %s137_s26  ;;  %s879_s9 = scalar_lea.hbm %s1069_s4, 1024 }
  0x15   : > { %p880_p0 = scmp.ne.s32.totalorder %s1069_s4, %s879_s9  ;;  %p881_p1 = pneg %p1073_p13 }
  0x16   : > { %s884_s17 = scalar_lea.hbm %s1199_s1, 2048  ;;  %p885_p4 = scmp.lt.u32.totalorder %s1069_s4, %s1199_s1 }
  0x17   : > { %p882_p2 = pnand %p881_p1, %p880_p0  ;;  %p886_p5 = scmp.lt.u32.totalorder %s884_s17, %s879_s9 }
  0x18   : > { %p888_p8 = scmp.lt.u32.totalorder %s879_s9, %s1069_s4 }
  0x19   : > { %p883_p3 = pneg %p882_p2  ;;  %p887_p7 = por %p886_p5, %p885_p4 }
  0x1b   : > { %p889_p10 = por %p888_p8, %p887_p7 }
  0x1d   : > { %p890_p9 = pnand %p889_p10, %p883_p3 }
  0x1f   : > { %893 = shalt.err (!%p890_p9)
}
  0x20   : > { %s894_s22 = scalar_lea.vmem %s1077_s6, 1024  ;;  %s977_s26 = smov [#allocation2]  }
  0x21   : > { %p895_p0 = scmp.ne.s32.totalorder %s1077_s6, %s894_s22  ;;  %s899_s27 = sshll.u32 %s977_s26, 4  ;;  %s900_s27 = int_to_ptr.vmem [resolvable:$false] %s899_s27 }
  0x22   : > { %s901_s28 = scalar_lea.vmem %s900_s27, 2048  ;;  %p902_p11 = scmp.lt.s32.totalorder %s1077_s6, %s900_s27 }
  0x23   : > { %p897_p2 = pnand %p895_p0, %p881_p1  ;;  %p903_p4 = scmp.lt.s32.totalorder %s901_s28, %s894_s22 }
  0x25   : > { %p898_p12 = pneg %p897_p2  ;;  %p904_p5 = por %p903_p4, %p902_p11 }
  0x27   : > { %p905_p7 = pnand %p904_p5, %p898_p12 }
  0x29   : > { %908 = shalt.err (!%p905_p7)
}
  0x2a   : > { %s978_s29 = smov 128   ;;  %s979_s30 = smov 8  }
  0x2b   : > { %833 = dma.hbm_to_vmem [thread:$0]  (!%p1073_p13), %s1069_s4, 1024, %s1077_s6, %s1079_s8, %s978_s29, %s978_s29, %s979_s30  }
  0x2c   : > { %p718_p9 = scmp.ge.s32.totalorder %s975_s15, 1  ;;  %p157_p1 = scmp.lt.s32.totalorder %s975_s15, 3 }
  0x2e   : > { %p158_p3 = pnand %p718_p9, %p157_p1 }
  0x2f   : > { %s1110_s5 = sand.u32 (!%p158_p3), 1, %s967_s13  }
  0x30   : > { %161 = sbr.rel (%p158_p3) target bundleno = 520 (0x208), region = 32  ;;  %s719_s9 = sshll.u32 (!%p158_p3), %s1110_s5, 6 }
  0x31   : > { %s164_s10 = scalar_lea.sflag (!%p158_p3), [#allocation3], %s1110_s5  ;;  %s167_s11 = scalar_lea.vmem (!%p158_p3), [#allocation2], %s719_s9 }
  0x37   : > { %954 = dma.done.wait (%p1049_p6), %s164_s10, 1024  }
  0x38   : > { %956 = vsyncadd (%p1049_p6), %s164_s10, 4294966272  ;;  %vm203_vm0 = vcmask 130048   ;;  %v193_v0 = vld [vmem:[%s1200_s2] sm:$0xff]  ;;  %v194_v1 = vld [vmem:[%s1200_s2 + $0x8] sm:$0xff]  ;;  %v980_v11 = vmov 0.0|0.0   ;;  %vm981_vm1 = vmmov 0  }
  0x39   : > { %v195_v2 = vld [vmem:[%s167_s11] sm:$0xff]  ;;  %v810_v3 = vpack.c.bf16 %v194_v1, %v193_v0  ;;  %v196_v4 = vld [vmem:[%s167_s11 + $0x8] sm:$0xff]  ;;  %v197_v5 = vld [vmem:[%s167_s11 + $0x10] sm:$0xff]  ;;  %814 = vmatprep.subr.bf16.mxu1 %v980_v11  ;;  %v982_v12 = vmov 0.0   ;;  %s720_s19 = sshll.u32 %s1110_s5, 5  ;;  %vm406_vm2 = vcmask 64512  }
  0x3a   : > { %770 = vmatprep.mubr.msk.f32.mxu0 %vm203_vm0, %v195_v2  ;;  %v198_v6 = vld [vmem:[%s167_s11 + $0x18] sm:$0xff]  ;;  %v199_v7 = vld [vmem:[%s167_s11 + $0x20] sm:$0xff]  ;;  %v200_v8 = vld [vmem:[%s167_s11 + $0x28] sm:$0xff]  ;;  %786 = vmatprep.mubr.msk.f32.mxu1 %vm981_vm1, %v982_v12  ;;  %s189_s20 = scalar_lea.vmem [#allocation5], %s720_s19  ;;  %s743_s26 = sshll.u32 %s1027_s16, 9 }
  0x3b   : > { %811 = vmatprep.subr.bf16.mxu0 %v810_v3  ;;  %v201_v9 = vld [vmem:[%s167_s11 + $0x30] sm:$0xff]  ;;  %v202_v10 = vld [vmem:[%s167_s11 + $0x38] sm:$0xff]  ;;  %v192_v17 = vld [vmem:[%s1198_s0] sm:$0xff]  ;;  %s638_s22 = sshll.u32 %s189_s20, 4  ;;  %s1153_s29 = scalar_lea.hbm %s1201_s3, %s743_s26  ;;  %s1147_s22 = int_to_ptr.vmem [resolvable:$true] %s638_s22 }
  0x3c   : > { %813 = vmatpush3.bf16.msra.mxu0 %v810_v3  ;;  %s625_s30 = scalar_lea.sflag [#allocation4], %s1110_s5  ;;  %s909_s16 = scalar_lea.vmem %s1147_s22, 512 }
  0x3d   : > { %p910_p6 = scmp.ne.s32.totalorder %s1147_s22, %s909_s16  ;;  %p1208_p11 = scmp.ne.s32.totalorder %s1205_s24, 0 }
  0x3e   : > { %s983_s9 = smov [#allocation5]  }
  0x3f   : > { %771 = vmatmul.mubr.msk.f32.vlgmr.msra.gmra.mrb[0].mxu0 %vm203_vm0, %v196_v4  ;;  %p911_p12 = pnand %p910_p6, %p1208_p11  ;;  %s913_s10 = sshll.u32 %s983_s9, 4  ;;  %s914_s10 = int_to_ptr.vmem [resolvable:$false] %s913_s10 }
  0x40   : > { %773 = vmatprep.mubr.msk.f32.mxu0 %vm203_vm0, %v197_v5  ;;  %s915_s11 = scalar_lea.vmem %s914_s10, 1024  ;;  %p916_p8 = scmp.lt.s32.totalorder %s1147_s22, %s914_s10 }
  0x41   : > { %p912_p13 = pneg %p911_p12  ;;  %p917_p10 = scmp.lt.s32.totalorder %s915_s11, %s909_s16 }
  0x43   : > { %774 = vmatmul.mubr.msk.f32.gmra.mrb[2].mxu0 %vm203_vm0, %v198_v6  ;;  %p918_p0 = por %p917_p10, %p916_p8 }
  0x44   : > { %776 = vmatprep.mubr.msk.f32.mxu0 %vm203_vm0, %v199_v7 }
  0x45   : > { %p919_p2 = pnand %p918_p0, %p912_p13 }
  0x47   : > { %777 = vmatmul.mubr.msk.f32.gmra.mrb[4].mxu0 %vm203_vm0, %v200_v8 }
  0x48   : > { %779 = vmatprep.mubr.msk.f32.mxu0 %vm203_vm0, %v201_v9 }
  0x4b   : > { %780 = vmatmul.mubr.msk.f32.gmra.mrb[6].mxu0 %vm203_vm0, %v202_v10 }
 0x112   : > { %v772_v13 = vpop.f32.mrb[0].mxu0 }
 0x113   : > { %v294_v14 = vpop.f32.mrb[1].mxu0 }
 0x114   : > { %v815_v15 = vpack.c.bf16 %v772_v13, %v294_v14 }
 0x116   : > { %v775_v16 = vpop.f32.mrb[2].mxu0  ;;  %816 = vmatpush3.bf16.msra.mxu1 %v815_v15 }
 0x117   : > { %v304_v18 = vpop.f32.mrb[3].mxu0  ;;  %817 = vmatprep.subr.bf16.mxu1 %v980_v11 }
 0x118   : > { %v818_v19 = vpack.c.bf16 %v775_v16, %v304_v18 }
 0x119   : > { %787 = vmatmul.mubr.msk.f32.vlgmr.msra.gmra.mrb[0].mxu1 %vm203_vm0, %v192_v17 }
 0x11a   : > { %v778_v20 = vpop.f32.mrb[4].mxu0  ;;  %819 = vmatpush3.bf16.msra.mxu1 %v818_v19  ;;  %793 = vmatprep.mubr.msk.f32.mxu1 %vm981_vm1, %v982_v12 }
 0x11b   : > { %v314_v21 = vpop.f32.mrb[5].mxu0  ;;  %820 = vmatprep.subr.bf16.mxu1 %v980_v11 }
 0x11c   : > { %v821_v22 = vpack.c.bf16 %v778_v20, %v314_v21 }
 0x11d   : > { %794 = vmatmul.mubr.msk.f32.vlgmr.msra.gmra.mrb[2].mxu1 %vm203_vm0, %v192_v17 }
 0x11e   : > { %v781_v23 = vpop.f32.mrb[6].mxu0  ;;  %822 = vmatpush3.bf16.msra.mxu1 %v821_v22  ;;  %800 = vmatprep.mubr.msk.f32.mxu1 %vm981_vm1, %v982_v12 }
 0x11f   : > { %v324_v24 = vpop.f32.mrb[7].mxu0  ;;  %823 = vmatprep.subr.bf16.mxu1 %v980_v11 }
 0x120   : > { %v824_v25 = vpack.c.bf16 %v781_v23, %v324_v24 }
 0x121   : > { %801 = vmatmul.mubr.msk.f32.vlgmr.msra.gmra.mrb[4].mxu1 %vm203_vm0, %v192_v17 }
 0x122   : > { %825 = vmatpush3.bf16.msra.mxu1 %v824_v25  ;;  %807 = vmatprep.mubr.msk.f32.mxu1 %vm981_vm1, %v982_v12 }
 0x125   : > { %808 = vmatmul.mubr.msk.f32.vlgmr.msra.gmra.mrb[6].mxu1 %vm203_vm0, %v192_v17 }
 0x1ec   : > { %v402_v26 = vpop.f32.mrb[0].mxu1 }
 0x1ed   : > { %407 = vst.msk [vmem:[%s189_s20] sm:$0xff] %vm406_vm2, %v402_v26  ;;  %v788_v27 = vpop.f32.mrb[1].mxu1 }
 0x1f0   : > { %v474_v28 = vpop.f32.mrb[2].mxu1 }
 0x1f1   : > { %731 = vst.msk [vmem:[%s189_s20 + $0x8] sm:$0xff] %vm406_vm2, %v474_v28  ;;  %v795_v29 = vpop.f32.mrb[3].mxu1 }
 0x1f4   : > { %v546_v30 = vpop.f32.mrb[4].mxu1 }
 0x1f5   : > { %733 = vst.msk [vmem:[%s189_s20 + $0x10] sm:$0xff] %vm406_vm2, %v546_v30  ;;  %v802_v31 = vpop.f32.mrb[5].mxu1 }
 0x1f8   : > { %v618_v32 = vpop.f32.mrb[6].mxu1 }
 0x1f9   : > { %735 = vst.msk [vmem:[%s189_s20 + $0x18] sm:$0xff] %vm406_vm2, %v618_v32  ;;  %v809_v33 = vpop.f32.mrb[7].mxu1 }
 0x1fa   : > { %922 = shalt.err (!%p919_p2)
}
 0x1fb   : > { %s923_s4 = scalar_lea.hbm %s1153_s29, 512  ;;  %s927_s8 = scalar_lea.hbm %s1201_s3, 1024 }
 0x1fc   : > { %p924_p4 = scmp.ne.s32.totalorder %s1153_s29, %s923_s4  ;;  %p928_p9 = scmp.lt.u32.totalorder %s1153_s29, %s1201_s3 }
 0x1fd   : > { %p929_p1 = scmp.lt.u32.totalorder %s927_s8, %s923_s4  ;;  %p931_p6 = scmp.lt.u32.totalorder %s923_s4, %s1153_s29 }
 0x1fe   : > { %p925_p5 = pnand %p924_p4, %p1208_p11 }
 0x1ff   : > { %p930_p3 = por %p929_p1, %p928_p9 }
 0x200   : > { %p926_p7 = pneg %p925_p5 }
 0x201   : > { %p932_p12 = por %p931_p6, %p930_p3 }
 0x203   : > { %p933_p13 = pnand %p932_p12, %p926_p7 }
 0x205   : > { %936 = shalt.err (!%p933_p13)
}
 0x206   : > { %s984_s19 = smov 128   ;;  %s985_s20 = smov 8  }
 0x207   : > { %828 = dma.vmem_to_hbm [thread:$0]  (%p1208_p11), %s1147_s22, 512, %s1153_s29, %s625_s30, %s984_s19, %s984_s19, %s985_s20  }
 0x208 PF: > { %s653_s26 = sand.u32 1, %s963_s12   ;;  %p1209_p8 = scmp.ne.s32.totalorder %s1206_s25, 0 }
 0x209   : > { %p1210_p10 = scmp.ge.s32.totalorder %s975_s15, 2  ;;  %s654_s27 = scalar_lea.sflag [#allocation4], %s653_s26 }
 0x20b   : > { %p835_p0 = pnand %p1210_p10, %p1209_p8 }
 0x20d   : > { %958 = dma.done.wait (!%p835_p0), %s654_s27, 512  }
 0x20e   : > { %960 = vsyncadd (!%p835_p0), %s654_s27, 4294966784  ;;  %p16_p2 = scmp.ge.s32.totalorder %s1031_s18, 4   ;;  %s1211_s12 = smov %s967_s13 }
 0x20f   : > { %s1212_s13 = smov %s971_s14  ;;  %s1213_s14 = smov %s1043_s21 }
 0x210   : > { %s1214_s15 = smov %s1031_s18  ;;  %18 = sbr.rel (!%p16_p2) target bundleno = 5 (0x5), region = 80 }
 0x217   :  { %659 = vsyncpa [#allocation3], 1 }
 0x218   :  { %661 = vsyncpa [#allocation3 + $0x1], 1 }
 0x219   :  { %662 = vsyncpa [#allocation4], 1 }
 0x21a   :  { %664 = vsyncpa [#allocation4 + $0x1], 1 }

</bundles_post_ra>
